<compile_context>
chip_gen: v7x
topology: tpu7x:2x2x1
jax: 0.10.0
libtpu: 0.0.40
codegen_flags: <defaults>
</compile_context>

<pallas_src>
import jax
import jax.numpy as jnp
from jax.experimental import pallas as pl
from jax.experimental.pallas import tpu as pltpu


def _round_up(n, m):
    return ((n + m - 1) // m) * m


def fc_kernel(x_ref, w2_ref, b2_ref, w3_ref, b3_ref, o_ref):
    # fc2: hidden = relu(x @ W2^T + b2).  Cast x -> bf16 inside the kernel so
    # the f32 activation is only read once from HBM (no wrapper cast pass).
    x = x_ref[...].astype(w2_ref.dtype)                        # (TB, D) bf16
    h = jnp.dot(x, w2_ref[...], preferred_element_type=jnp.float32)
    h = jnp.maximum(h + b2_ref[...], 0.0)                      # (TB, H) f32
    # fc2_drop has p=0.0 -> identity; nothing to do.
    # fc3: only C=2 output columns -> per-column VPU lane-reductions instead of
    # a lane-padded MXU matmul; output store stays narrow (TB, 2).
    w3 = w3_ref[...].astype(jnp.float32)                       # (C, H) f32
    C = w3_ref.shape[0]
    cols = [jnp.sum(h * w3[c:c + 1, :], axis=-1, keepdims=True) for c in range(C)]
    logit = jnp.concatenate(cols, axis=-1) + b3_ref[...]       # (TB, C) f32
    o_ref[...] = logit.astype(o_ref.dtype)


def prepare_params(w2, b2, w3, b3, compute_dtype=jnp.bfloat16):
    """One-time parameter prep (do NOT call per forward):
       w2: (H, D), b2: (H,), w3: (C, H), b3: (C,)  [PyTorch nn.Linear layout]
       -> W2 pre-transposed to (D, H) bf16 for the MXU; W3 kept in its natural
          (C, H) layout (rows broadcast against the hidden); f32 biases."""
    H, D = w2.shape
    C = w3.shape[0]
    w2_t = jnp.asarray(w2.T, dtype=compute_dtype)                 # (D, H)
    w3_r = jnp.asarray(w3, dtype=compute_dtype)                   # (C, H)
    b2_r = jnp.asarray(b2, dtype=jnp.float32).reshape(1, H)       # (1, H)
    b3_r = jnp.asarray(b3, dtype=jnp.float32).reshape(1, C)       # (1, C)
    return {"w2_t": w2_t, "b2": b2_r, "w3": w3_r, "b3": b3_r}


def fc_forward(x, params, *, block_b=1024, min_pallas_batch=256):
    """x: (B, D) -> (B, 2) logits. params from prepare_params (called once)."""
    B, D = x.shape
    w2_t, b2_r = params["w2_t"], params["b2"]
    w3_r, b3_r = params["w3"], params["b3"]
    H = w2_t.shape[1]
    C = w3_r.shape[0]
    out_dtype = x.dtype

    if B < min_pallas_batch:
        # TODO(synk): at tiny batches a standalone pallas_call is pure launch
        # overhead; in a real model fuse this FC into the surrounding kernel.
        h = jnp.maximum(
            jnp.dot(x.astype(w2_t.dtype), w2_t,
                    preferred_element_type=jnp.float32) + b2_r, 0.0)
        return (h @ w3_r.T.astype(jnp.float32) + b3_r).astype(out_dtype)

    # Batch tile: multiple of 8 (f32 sublane); prefer >= 2 grid steps when B
    # allows so the "parallel" axis can use both TensorCores on v7x.
    TB = min(block_b, _round_up(pl.cdiv(B, 2), 8))
    TB = max(min(TB, _round_up(B, 8)), 8)
    grid = (pl.cdiv(B, TB),)

    # Right-sized VMEM request from the lane-padded footprint (+ headroom).
    lane = lambda n: _round_up(n, 128)
    est = (
        2 * TB * lane(D) * x.dtype.itemsize                      # x double buffer
        + TB * lane(H) * 4                                       # f32 hidden
        + 2 * TB * lane(C) * jnp.dtype(out_dtype).itemsize       # out double buffer
        + _round_up(D, 16) * lane(H) * w2_t.dtype.itemsize       # resident W2^T
        + _round_up(C, 16) * lane(H) * w3_r.dtype.itemsize       # resident W3
        + 8 * (lane(H) + lane(C)) * 4                            # resident biases
    )
    vmem_limit = int(min(max(4 * est, 8 * 1024 * 1024), 64 * 1024 * 1024))

    return pl.pallas_call(
        fc_kernel,
        out_shape=jax.ShapeDtypeStruct((B, C), out_dtype),
        grid=grid,
        in_specs=[
            pl.BlockSpec((TB, D), lambda i: (i, 0)),   # x: tiled over batch (f32)
            pl.BlockSpec((D, H), lambda i: (0, 0)),    # W2^T: VMEM-resident bf16
            pl.BlockSpec((1, H), lambda i: (0, 0)),    # b2 (f32)
            pl.BlockSpec((C, H), lambda i: (0, 0)),    # W3: VMEM-resident bf16
            pl.BlockSpec((1, C), lambda i: (0, 0)),    # b3 (f32)
        ],
        out_specs=pl.BlockSpec((TB, C), lambda i: (i, 0)),   # narrow (TB, 2) store
        compiler_params=pltpu.CompilerParams(
            dimension_semantics=("parallel",),
            vmem_limit_bytes=vmem_limit,
        ),
    )(x, w2_t, b2_r, w3_r, b3_r)


def init_params(key, input_size, hidden_size):
    """Deterministic init mimicking nn.Linear: U(-1/sqrt(fan_in), 1/sqrt(fan_in))."""
    k1, k2, k3, k4 = jax.random.split(key, 4)
    bound2 = 1.0 / (input_size ** 0.5)
    bound3 = 1.0 / (hidden_size ** 0.5)
    w2 = jax.random.uniform(k1, (hidden_size, input_size), jnp.float32,
                            minval=-bound2, maxval=bound2)
    b2 = jax.random.uniform(k2, (hidden_size,), jnp.float32,
                            minval=-bound2, maxval=bound2)
    w3 = jax.random.uniform(k3, (2, hidden_size), jnp.float32,
                            minval=-bound3, maxval=bound3)
    b3 = jax.random.uniform(k4, (2,), jnp.float32,
                            minval=-bound3, maxval=bound3)
    return w2, b2, w3, b3


if __name__ == "__main__":
    input_size, hidden_size, num_classes = 32, 32, 2   # fc3 always maps to 2 logits
    batch = 8

    key = jax.random.PRNGKey(0)
    kx, kp = jax.random.split(key)
    x = jax.random.normal(kx, (batch, input_size), jnp.float32)
    w2, b2, w3, b3 = init_params(kp, input_size, hidden_size)

    params = prepare_params(w2, b2, w3, b3)   # one-time prep (transpose/cast)

    # Force the Pallas path at this tiny demo batch (the default dispatch would
    # route B=8 to the plain-XLA expression).
    logit = fc_forward(x, params, min_pallas_batch=0)
    jax.block_until_ready(logit)

    # Reference 1: emulate the kernel's bf16-input / f32-accumulate math.
    xb = x.astype(jnp.bfloat16).astype(jnp.float32)
    w2b = w2.astype(jnp.bfloat16).astype(jnp.float32)
    w3b = w3.astype(jnp.bfloat16).astype(jnp.float32)
    h_ref = jnp.maximum(xb @ w2b.T + b2, 0.0)
    ref_bf16 = h_ref @ w3b.T + b3
    # Reference 2: full-f32 module math (looser tolerance for bf16 quantization).
    ref_f32 = jnp.maximum(x @ w2.T + b2, 0.0) @ w3.T + b3

    assert logit.shape == (batch, 2)
    assert jnp.allclose(logit, ref_bf16, atol=1e-2, rtol=1e-2)
    assert jnp.allclose(logit, ref_f32, atol=5e-2, rtol=5e-2)

    print("KERNEL_OK")
</pallas_src>

<mosaic_0001>
module attributes {stable_mosaic.version = 11 : i64} {
  func.func @fc_kernel(%arg0: i32, %arg1: memref<8x32xf32, #tpu.memory_space<vmem>>, %arg2: memref<32x32xbf16, #tpu.memory_space<vmem>>, %arg3: memref<1x32xf32, #tpu.memory_space<vmem>>, %arg4: memref<2x32xbf16, #tpu.memory_space<vmem>>, %arg5: memref<1x2xf32, #tpu.memory_space<vmem>>, %arg6: memref<8x2xf32, #tpu.memory_space<vmem>>) attributes {dimension_semantics = [#tpu.dimension_semantics<parallel>], iteration_bounds = array<i64: 1>, scalar_prefetch = 0 : i64, scratch_operands = 0 : i64, tpu.core_type = #tpu.core_type<tc>, window_params = [{transform_indices = @transform_0, window_bounds = array<i64: 8, 32>}, {pipeline_mode = #tpu.pipeline_mode<synchronous>, transform_indices = @transform_1, window_bounds = array<i64: 32, 32>}, {pipeline_mode = #tpu.pipeline_mode<synchronous>, transform_indices = @transform_2, window_bounds = array<i64: 1, 32>}, {pipeline_mode = #tpu.pipeline_mode<synchronous>, transform_indices = @transform_3, window_bounds = array<i64: 2, 32>}, {pipeline_mode = #tpu.pipeline_mode<synchronous>, transform_indices = @transform_4, window_bounds = array<i64: 1, 2>}, {transform_indices = @transform_5, window_bounds = array<i64: 8, 2>}]} {
    %c0 = arith.constant 0 : index
    %c0_0 = arith.constant 0 : index
    %0 = vector.load %arg1[%c0, %c0_0] : memref<8x32xf32, #tpu.memory_space<vmem>>, vector<8x32xf32>
    %1 = arith.truncf %0 : vector<8x32xf32> to vector<8x32xbf16>
    %c0_1 = arith.constant 0 : index
    %c0_2 = arith.constant 0 : index
    %2 = vector.load %arg2[%c0_1, %c0_2] : memref<32x32xbf16, #tpu.memory_space<vmem>>, vector<32x32xbf16>
    %cst = arith.constant dense<0.000000e+00> : vector<8x32xf32>
    %3 = tpu.matmul %1, %2, %cst {dimension_numbers = #tpu.dot_dimension_numbers<[1], [0], [0], [1], [0, 0, 1, 1], [], []>} : vector<8x32xbf16>, vector<32x32xbf16>, vector<8x32xf32> -> vector<8x32xf32>
    %c0_3 = arith.constant 0 : index
    %c0_4 = arith.constant 0 : index
    %4 = vector.load %arg3[%c0_3, %c0_4] : memref<1x32xf32, #tpu.memory_space<vmem>>, vector<1x32xf32>
    %5 = vector.broadcast %4 : vector<1x32xf32> to vector<8x32xf32>
    %6 = arith.addf %3, %5 : vector<8x32xf32>
    %cst_5 = arith.constant 0.000000e+00 : f32
    %7 = vector.broadcast %cst_5 : f32 to vector<8x32xf32>
    %8 = arith.maximumf %6, %7 : vector<8x32xf32>
    %c0_6 = arith.constant 0 : index
    %c0_7 = arith.constant 0 : index
    %9 = vector.load %arg4[%c0_6, %c0_7] : memref<2x32xbf16, #tpu.memory_space<vmem>>, vector<2x32xbf16>
    %10 = arith.extf %9 : vector<2x32xbf16> to vector<2x32xf32>
    %11 = vector.extract_strided_slice %10 {offsets = [0, 0], sizes = [1, 32], strides = [1, 1]} : vector<2x32xf32> to vector<1x32xf32>
    %12 = vector.broadcast %11 : vector<1x32xf32> to vector<8x32xf32>
    %13 = arith.mulf %8, %12 : vector<8x32xf32>
    %cst_8 = arith.constant dense<0.000000e+00> : vector<8xf32>
    %14 = vector.multi_reduction <add>, %13, %cst_8 [1] : vector<8x32xf32> to vector<8xf32>
    %15 = vector.shape_cast %14 : vector<8xf32> to vector<8x1xf32>
    %16 = vector.extract_strided_slice %10 {offsets = [1, 0], sizes = [1, 32], strides = [1, 1]} : vector<2x32xf32> to vector<1x32xf32>
    %17 = vector.broadcast %16 : vector<1x32xf32> to vector<8x32xf32>
    %18 = arith.mulf %8, %17 : vector<8x32xf32>
    %cst_9 = arith.constant dense<0.000000e+00> : vector<8xf32>
    %19 = vector.multi_reduction <add>, %18, %cst_9 [1] : vector<8x32xf32> to vector<8xf32>
    %20 = vector.shape_cast %19 : vector<8xf32> to vector<8x1xf32>
    %21 = tpu.concatenate %15, %20 in 1 : vector<8x1xf32>, vector<8x1xf32> -> vector<8x2xf32>
    %c0_10 = arith.constant 0 : index
    %c0_11 = arith.constant 0 : index
    %22 = vector.load %arg5[%c0_10, %c0_11] : memref<1x2xf32, #tpu.memory_space<vmem>>, vector<1x2xf32>
    %23 = vector.broadcast %22 : vector<1x2xf32> to vector<8x2xf32>
    %24 = arith.addf %21, %23 : vector<8x2xf32>
    %c0_12 = arith.constant 0 : index
    %c0_13 = arith.constant 0 : index
    %25 = vector.load %arg6[%c0_12, %c0_13] : memref<8x2xf32, #tpu.memory_space<vmem>>, vector<8x2xf32>
    tpu.vector_store %arg6[%c0_12, %c0_13], %24 {strides = array<i32>} : memref<8x2xf32, #tpu.memory_space<vmem>>, vector<8x2xf32>,
    return
  }
  func.func @transform_0(%arg0: i32) -> (i32, i32) {
    %c0_i32 = arith.constant 0 : i32
    %c0_i32_0 = arith.constant 0 : i32
    return %arg0, %c0_i32 : i32, i32
  }
  func.func @transform_1(%arg0: i32) -> (i32, i32) {
    %c0_i32 = arith.constant 0 : i32
    %c0_i32_0 = arith.constant 0 : i32
    %c0_i32_1 = arith.constant 0 : i32
    return %c0_i32, %c0_i32_0 : i32, i32
  }
  func.func @transform_2(%arg0: i32) -> (i32, i32) {
    %c0_i32 = arith.constant 0 : i32
    %c0_i32_0 = arith.constant 0 : i32
    %c0_i32_1 = arith.constant 0 : i32
    return %c0_i32, %c0_i32_0 : i32, i32
  }
  func.func @transform_3(%arg0: i32) -> (i32, i32) {
    %c0_i32 = arith.constant 0 : i32
    %c0_i32_0 = arith.constant 0 : i32
    %c0_i32_1 = arith.constant 0 : i32
    return %c0_i32, %c0_i32_0 : i32, i32
  }
  func.func @transform_4(%arg0: i32) -> (i32, i32) {
    %c0_i32 = arith.constant 0 : i32
    %c0_i32_0 = arith.constant 0 : i32
    %c0_i32_1 = arith.constant 0 : i32
    return %c0_i32, %c0_i32_0 : i32, i32
  }
  func.func @transform_5(%arg0: i32) -> (i32, i32) {
    %c0_i32 = arith.constant 0 : i32
    %c0_i32_0 = arith.constant 0 : i32
    return %arg0, %c0_i32 : i32, i32
  }
}

</mosaic_0001>

<bundles_post_ra>
// kernel: tpu_custom_call.1
= control target key start
LH: loop header
LB: loop body
LE: loop exit
PB: predicated region body
PF: predicated region fallthrough
CT: control target
= control target key end

     0   :  { %10 = vsyncpa [#allocation3], 0  ;;  %s307_s0 = inlined_call_operand.hbm [shape: f32[8,32], index: 0, kind: input, shape index: {}]   ;;  %s308_s1 = inlined_call_operand.hbm [shape: bf16[32,32], index: 1, kind: input, shape index: {}]   ;;  %s309_s2 = inlined_call_operand.vmem [shape: f32[1,32], index: 2, kind: input, shape index: {}]   ;;  %s310_s3 = inlined_call_operand.vmem [shape: bf16[2,32], index: 3, kind: input, shape index: {}]   ;;  %s311_s4 = inlined_call_operand.vmem [shape: f32[1,2], index: 4, kind: input, shape index: {}]   ;;  %s312_s5 = inlined_call_operand.vmem [shape: f32[8,2], index: 5, kind: output, shape index: {}]  }
   0x1   :  { %11 = vsyncpa [#allocation5], 0  ;;  %s225_s18 = smov [#allocation2]   ;;  %s226_s20 = smov [#allocation4]  }
   0x2   :  { %s18_s19 = sshll.u32 %s225_s18, 4  ;;  %s27_s21 = sshll.u32 %s226_s20, 4  ;;  %s19_s19 = int_to_ptr.vmem [resolvable:$true] %s18_s19  ;;  %s261_s21 = int_to_ptr.vmem [resolvable:$true] %s27_s21 }
   0x3   :  { %s177_s24 = scalar_lea.hbm %s307_s0, 128 }
   0x4   :  { %p178_p0 = scmp.ne.s32.totalorder %s307_s0, %s177_s24  ;;  %p181_p1 = scmp.lt.u32.totalorder %s177_s24, %s307_s0 }
   0x6   :  { %p183_p2 = pnand %p181_p1, %p178_p0 }
   0x8   :  { %186 = shalt.err (!%p183_p2)
}
   0x9   :  { %s187_s29 = scalar_lea.vmem %s19_s19, 128  ;;  %p192_p4 = scmp.lt.s32.totalorder %s19_s19, %s19_s19 }
   0xa   :  { %p188_p3 = scmp.ne.s32.totalorder %s19_s19, %s187_s29  ;;  %p193_p5 = scmp.lt.s32.totalorder %s187_s29, %s187_s29 }
   0xc   :  { %p194_p6 = por %p193_p5, %p192_p4 }
   0xe   :  { %p195_p7 = pnand %p194_p6, %p188_p3 }
  0x10   :  { %198 = shalt.err (!%p195_p7)
}
  0x11   :  { %21 = dma.hbm_to_vmem [thread:$0]  %s307_s0, 128, %s19_s19, [#allocation3]  }
  0x12   :  { %s199_s9 = scalar_lea.hbm %s308_s1, 256 }
  0x13   :  { %p200_p8 = scmp.ne.s32.totalorder %s308_s1, %s199_s9  ;;  %p203_p9 = scmp.lt.u32.totalorder %s199_s9, %s308_s1 }
  0x15   :  { %p205_p10 = pnand %p203_p9, %p200_p8 }
  0x17   :  { %208 = shalt.err (!%p205_p10)
}
  0x18   :  { %s209_s14 = scalar_lea.vmem %s261_s21, 256  ;;  %p214_p12 = scmp.lt.s32.totalorder %s261_s21, %s261_s21 }
  0x19   :  { %p210_p11 = scmp.ne.s32.totalorder %s261_s21, %s209_s14  ;;  %p215_p13 = scmp.lt.s32.totalorder %s209_s14, %s209_s14 }
  0x1b   :  { %p216_p0 = por %p215_p13, %p214_p12 }
  0x1d   :  { %p217_p1 = pnand %p216_p0, %p210_p11 }
  0x1f   :  { %220 = shalt.err (!%p217_p1)
}
  0x20   :  { %s227_s0 = smov 64   ;;  %s228_s15 = smov 4  }
  0x21   :  { %33 = dma.hbm_to_vmem [thread:$0]  %s308_s1, 256, %s261_s21, [#allocation5], %s227_s0, %s227_s0, %s228_s15  }
  0x22   :  { %221 = dma.done.wait [#allocation3], 128  }
  0x23   :  { %222 = vsyncadd [#allocation3], 4294967168 }
  0x24   :  { %223 = dma.done.wait [#allocation5], 256  }
  0x25   :  { %224 = vsyncadd [#allocation5], 4294967040  ;;  %v229_v0 = vmov 0.0   ;;  %vm230_vm0 = vmmov 0   ;;  %v175_v1 = vld [vmem:[#allocation4] sm:$0xff]   ;;  %v176_v2 = vld [vmem:[#allocation4 + $0x8] sm:$0xff]   ;;  %v119_v5 = vlaneseq }
  0x26   :  { %161 = vmatprep.subr.bf16.mxu0 %v229_v0  ;;  %165 = vmatprep.mubr.msk.bf16.mxu0 %vm230_vm0, %v229_v0  ;;  %v47_v3 = vld [vmem:[#allocation2] sm:$0xff]  ;;  %vm72_vm1 = vcmask 261120   ;;  %vm135_vm2 = vcmask 7168   ;;  %vm145_vm3 = vcmask 15360  }
  0x27   :  { %162 = vmatpush3.bf16.msra.mxu0 %v175_v1  ;;  %v48_v4 = vpack.c.bf16 %v47_v3, %v47_v3  ;;  %v120_v6 = vshrl.u32 %v119_v5, 7  ;;  %v117_v7 = vld [vmem:[%s310_s3] sm:$0x1] }
  0x28   :  { %163 = vmatprep.subr.bf16.mxu0 %v229_v0  ;;  %v118_v8 = vunpack.c.l.bf16 %v117_v7  ;;  %v153_v10 = vld [vmem:[%s309_s2] ss:$0 sm:$0xff] }
  0x29   :  { %v121_v9 = vsub.s32 0, %v120_v6  ;;  %v129_v11 = vsub.s32 1, %v120_v6  ;;  %v157_v25 = vld [vmem:[%s311_s4] ss:$0 sm:$0xff] }
  0x2b   :  { %164 = vmatpush3.bf16.msra.mxu0 %v176_v2  ;;  %v122_v15 = vrot.slane %v118_v8, %v121_v9  ;;  %v130_v19 = vrot.slane %v118_v8, %v129_v11 }
  0x2e   :  { %166 = vmatmul.mubr.msk.bf16.vlgmr.msra.gmra.mrb[0].mxu0 %vm72_vm1, %v48_v4 }
 0x101   :  { %v110_v12 = vpop.f32.mrb[0].mxu0 }
 0x102   :  { %v111_v13 = vadd.f32 %v153_v10, %v110_v12  ;;  %v167_v14 = vpop.f32.mrb[1].mxu0 }
 0x103   :  { %v113_v16 = vpop.f32.mrb[2].mxu0 }
 0x104   :  { %v116_v17 = vmax.f32 %v111_v13, 0.0  ;;  %v168_v18 = vpop.f32.mrb[3].mxu0 }
 0x106   :  { %v123_v20 = vmul.f32 %v122_v15, %v116_v17  ;;  %v131_v22 = vmul.f32 %v130_v19, %v116_v17 }
 0x108   :  { %v124_v21 = vsel %vm72_vm1, %v123_v20, 0.0  ;;  %v132_v23 = vsel %vm72_vm1, %v131_v22, 0.0 }
 0x109   :  { %125 = vadd.xlane.f32.xlu0 %v124_v21 }
 0x10d   :  { %133 = vadd.xlane.f32.xlu0 %v132_v23 }
 0x196   :  { %v126_v24 = vpop.xlane.xlu0 %125 }
 0x19a   :  { %v134_v26 = vpop.xlane.xlu0 %133 }
 0x19b   :  { %v136_v27 = vsel %vm135_vm2, %v126_v24, %v134_v26 }
 0x19c   :  { %v144_v28 = vadd.f32 %v157_v25, %v136_v27 }
 0x19e   :  { %146 = vst.msk [vmem:[%s312_s5] sm:$0xff] %vm145_vm3, %v144_v28 }
 0x19f   :  { %151 = vsyncpa [#allocation3], 1 }
 0x1a0   :  { %152 = vsyncpa [#allocation5], 1 }

</bundles_post_ra>
